<compile_context>
chip_gen: v5e
topology: v5e:2x2
jax: 0.10.0
libtpu: 0.0.40
codegen_flags: <defaults>
</compile_context>

<pallas_src>
import jax
import jax.numpy as jnp
from jax import lax
from jax.experimental import pallas as pl
from jax.experimental.pallas import tpu as pltpu


def _logit_map_kernel_vpu(x_ref, w_ref, b_ref, o_ref):
    # x_ref: [N, BC] lane-dense X^T block; w_ref: [N, N] = W^T (resident);
    # b_ref: [N, BC] pre-expanded bias slab; o_ref: [N, BC] f32 output.
    # N unrolled broadcast multiply-adds on the VPU (exact f32, no MXU drain).
    n = w_ref.shape[0]
    x = x_ref[...]
    wt = w_ref[...]
    acc = b_ref[...]
    for k in range(n):                       # static unroll, n <= 16
        acc = acc + wt[:, k:k + 1] * x[k:k + 1, :]
    o_ref[...] = acc.astype(o_ref.dtype)


def _logit_map_kernel_mxu(x_ref, w_ref, b_ref, o_ref):
    # Transposed MXU form: W^T (N,N) @ X^T (N,BC) fills BC dense result
    # columns per pass; f32 accumulation.
    y = jnp.dot(w_ref[...], x_ref[...], preferred_element_type=jnp.float32)
    o_ref[...] = (y + b_ref[...]).astype(o_ref.dtype)


def _choose_block_cols(total_cols, n_rows, itemsize=4):
    """Pick the lane (column) width of each grid block."""
    # Double-buffered VMEM bytes per column: x + bias + out blocks (no lane
    # padding: blocks are already 128-dense in the last dim).
    bytes_per_col = 3 * 2 * n_rows * itemsize
    vmem_budget = 24 << 20                       # headroom under the 48 MiB scoped limit
    max_cols_vmem = max(128, (vmem_budget // max(bytes_per_col, 1)) // 128 * 128)
    # Small problems: one resident block (block == full array also satisfies
    # the (8,128) rule when total_cols % 128 != 0). Per-step overhead ~0.35us
    # makes extra grid steps pure loss here.
    if total_cols <= min(max_cols_vmem, 16 * 1024):
        return total_cols
    # Large problems: big lane-dense 128-multiple blocks, but keep >= 8 grid
    # steps so double-buffering has work to hide and both v7x TensorCores get
    # >= 3-4 steps each under dimension_semantics=("parallel",).
    by_steps = max(128, (pl.cdiv(total_cols, 8) // 128) * 128)
    return max(128, min(max_cols_vmem, by_steps))


def logit_map_forward(co_mats, layer_idc, w, layer_emb, *, block_cols=None):
    """co_mats: [S, N, N] f32, layer_idc: [S] int, w: [N, N] f32,
    layer_emb: [L, N] f32  ->  logits [S, N, N] f32."""
    S, N, _ = co_mats.shape
    f32 = jnp.float32

    # Per-sample bias rows via a tiny XLA gather over the [L, N] table.
    bias = jnp.take(layer_emb.astype(f32), layer_idc.astype(jnp.int32), axis=0)  # [S, N]

    # Lane-dense transposed slabs (wrapper-side layout plumbing):
    #   x_t[j, s*N + i] = co_mats[s, i, j]
    #   b_t[j, s*N + i] = bias[s, j]
    x_t = jnp.transpose(co_mats.astype(f32), (2, 0, 1)).reshape(N, S * N)
    b_t = jnp.broadcast_to(bias.T[:, :, None], (N, S, N)).reshape(N, S * N)
    w_t = jnp.transpose(w.astype(f32))                                           # W^T [N, N]

    total = S * N
    if block_cols is None:
        bc = _choose_block_cols(total, N)
    else:
        bc = int(block_cols)
        bc = total if bc >= total else max(128, (bc // 128) * 128)

    padded = pl.cdiv(total, bc) * bc
    if padded != total:
        # Ragged tail: zero-pad columns of the slab we already materialize for
        # lane-density (padded outputs are sliced off below). For huge ragged S
        # a masked final block would avoid even this suffix pad.
        x_t = jnp.pad(x_t, ((0, 0), (0, padded - total)))
        b_t = jnp.pad(b_t, ((0, 0), (0, padded - total)))

    kernel = _logit_map_kernel_vpu if N <= 16 else _logit_map_kernel_mxu

    bytes_accessed = 4 * (x_t.size + b_t.size + w_t.size + N * padded)
    out_t = pl.pallas_call(
        kernel,
        out_shape=jax.ShapeDtypeStruct((N, padded), f32),
        grid_spec=pltpu.PrefetchScalarGridSpec(
            num_scalar_prefetch=0,
            grid=(padded // bc,),
            in_specs=[
                pl.BlockSpec((N, bc), lambda i: (0, i)),   # X^T slab (lane-dense)
                pl.BlockSpec((N, N), lambda i: (0, 0)),    # W^T (resident across steps)
                pl.BlockSpec((N, bc), lambda i: (0, i)),   # pre-expanded bias slab
            ],
            out_specs=pl.BlockSpec((N, bc), lambda i: (0, i)),
        ),
        compiler_params=pltpu.CompilerParams(
            dimension_semantics=("parallel",),
            vmem_limit_bytes=48 << 20,
        ),
        cost_estimate=pl.CostEstimate(
            flops=2 * S * N * N * N,
            transcendentals=0,
            bytes_accessed=int(bytes_accessed),
        ),
    )(x_t, w_t, b_t)

    # Un-transpose once in the wrapper: [N, S*N] -> [S, N, N].
    return out_t[:, :total].reshape(N, S, N).transpose(1, 2, 0)


if __name__ == "__main__":
    num_nodes = 8       # N (module's num_nodes)
    num_samples = 64    # S (batch of co-occurrence matrices)
    num_layers = 8      # L (layer-embedding table size)

    key = jax.random.PRNGKey(0)
    k_co, k_idc, k_w, k_emb = jax.random.split(key, 4)

    co_mats = jax.random.uniform(
        k_co, (num_samples, num_nodes, num_nodes), dtype=jnp.float32)
    layer_idc = jax.random.randint(
        k_idc, (num_samples,), 0, num_layers, dtype=jnp.int32)

    # deterministic synthetic parameters (no checkpoint load)
    w = jax.random.normal(k_w, (num_nodes, num_nodes), dtype=jnp.float32) * 0.1
    layer_emb = jax.random.normal(
        k_emb, (num_layers, num_nodes), dtype=jnp.float32) * 0.1

    # pure-JAX reference (full-f32 matmul, matching torch f32 semantics)
    ref = (jnp.einsum("sij,jk->sik", co_mats, w,
                      precision=lax.Precision.HIGHEST)
           + layer_emb[layer_idc][:, None, :])

    # default path: single resident lane-dense block, grid=(1,)
    out = jax.block_until_ready(
        logit_map_forward(co_mats, layer_idc, w, layer_emb))
    assert out.shape == (num_samples, num_nodes, num_nodes)
    assert jnp.allclose(out, ref, atol=1e-5, rtol=1e-5)

    # ragged / multi-block path: S*N = 296 columns, block 128 -> grid=(3,) with
    # zero-padded tail columns sliced off
    out_odd = jax.block_until_ready(
        logit_map_forward(co_mats[:37], layer_idc[:37], w, layer_emb,
                          block_cols=128))
    assert out_odd.shape == (37, num_nodes, num_nodes)
    assert jnp.allclose(out_odd, ref[:37], atol=1e-5, rtol=1e-5)

    print("KERNEL_OK")
</pallas_src>

<mosaic_0001>
module attributes {stable_mosaic.version = 11 : i64} {
  func.func @_logit_map_kernel_vpu(%arg0: i32, %arg1: memref<8x512xf32, #tpu.memory_space<vmem>>, %arg2: memref<8x8xf32, #tpu.memory_space<vmem>>, %arg3: memref<8x512xf32, #tpu.memory_space<vmem>>, %arg4: memref<8x512xf32, #tpu.memory_space<vmem>>) attributes {dimension_semantics = [#tpu.dimension_semantics<parallel>], iteration_bounds = array<i64: 1>, scalar_prefetch = 0 : i64, scratch_operands = 0 : i64, tpu.core_type = #tpu.core_type<tc>, window_params = [{transform_indices = @transform_0, window_bounds = array<i64: 8, 512>}, {pipeline_mode = #tpu.pipeline_mode<synchronous>, transform_indices = @transform_1, window_bounds = array<i64: 8, 8>}, {transform_indices = @transform_2, window_bounds = array<i64: 8, 512>}, {transform_indices = @transform_3, window_bounds = array<i64: 8, 512>}]} {
    %c0 = arith.constant 0 : index
    %c0_0 = arith.constant 0 : index
    %0 = vector.load %arg1[%c0, %c0_0] : memref<8x512xf32, #tpu.memory_space<vmem>>, vector<8x512xf32>
    %c0_1 = arith.constant 0 : index
    %c0_2 = arith.constant 0 : index
    %1 = vector.load %arg2[%c0_1, %c0_2] : memref<8x8xf32, #tpu.memory_space<vmem>>, vector<8x8xf32>
    %c0_3 = arith.constant 0 : index
    %c0_4 = arith.constant 0 : index
    %2 = vector.load %arg3[%c0_3, %c0_4] : memref<8x512xf32, #tpu.memory_space<vmem>>, vector<8x512xf32>
    %3 = vector.extract_strided_slice %1 {offsets = [0, 0], sizes = [8, 1], strides = [1, 1]} : vector<8x8xf32> to vector<8x1xf32>
    %4 = vector.extract_strided_slice %0 {offsets = [0, 0], sizes = [1, 512], strides = [1, 1]} : vector<8x512xf32> to vector<1x512xf32>
    %5 = vector.broadcast %3 : vector<8x1xf32> to vector<8x512xf32>
    %6 = vector.broadcast %4 : vector<1x512xf32> to vector<8x512xf32>
    %7 = arith.mulf %5, %6 : vector<8x512xf32>
    %8 = arith.addf %2, %7 : vector<8x512xf32>
    %9 = vector.extract_strided_slice %1 {offsets = [0, 1], sizes = [8, 1], strides = [1, 1]} : vector<8x8xf32> to vector<8x1xf32>
    %10 = vector.extract_strided_slice %0 {offsets = [1, 0], sizes = [1, 512], strides = [1, 1]} : vector<8x512xf32> to vector<1x512xf32>
    %11 = vector.broadcast %9 : vector<8x1xf32> to vector<8x512xf32>
    %12 = vector.broadcast %10 : vector<1x512xf32> to vector<8x512xf32>
    %13 = arith.mulf %11, %12 : vector<8x512xf32>
    %14 = arith.addf %8, %13 : vector<8x512xf32>
    %15 = vector.extract_strided_slice %1 {offsets = [0, 2], sizes = [8, 1], strides = [1, 1]} : vector<8x8xf32> to vector<8x1xf32>
    %16 = vector.extract_strided_slice %0 {offsets = [2, 0], sizes = [1, 512], strides = [1, 1]} : vector<8x512xf32> to vector<1x512xf32>
    %17 = vector.broadcast %15 : vector<8x1xf32> to vector<8x512xf32>
    %18 = vector.broadcast %16 : vector<1x512xf32> to vector<8x512xf32>
    %19 = arith.mulf %17, %18 : vector<8x512xf32>
    %20 = arith.addf %14, %19 : vector<8x512xf32>
    %21 = vector.extract_strided_slice %1 {offsets = [0, 3], sizes = [8, 1], strides = [1, 1]} : vector<8x8xf32> to vector<8x1xf32>
    %22 = vector.extract_strided_slice %0 {offsets = [3, 0], sizes = [1, 512], strides = [1, 1]} : vector<8x512xf32> to vector<1x512xf32>
    %23 = vector.broadcast %21 : vector<8x1xf32> to vector<8x512xf32>
    %24 = vector.broadcast %22 : vector<1x512xf32> to vector<8x512xf32>
    %25 = arith.mulf %23, %24 : vector<8x512xf32>
    %26 = arith.addf %20, %25 : vector<8x512xf32>
    %27 = vector.extract_strided_slice %1 {offsets = [0, 4], sizes = [8, 1], strides = [1, 1]} : vector<8x8xf32> to vector<8x1xf32>
    %28 = vector.extract_strided_slice %0 {offsets = [4, 0], sizes = [1, 512], strides = [1, 1]} : vector<8x512xf32> to vector<1x512xf32>
    %29 = vector.broadcast %27 : vector<8x1xf32> to vector<8x512xf32>
    %30 = vector.broadcast %28 : vector<1x512xf32> to vector<8x512xf32>
    %31 = arith.mulf %29, %30 : vector<8x512xf32>
    %32 = arith.addf %26, %31 : vector<8x512xf32>
    %33 = vector.extract_strided_slice %1 {offsets = [0, 5], sizes = [8, 1], strides = [1, 1]} : vector<8x8xf32> to vector<8x1xf32>
    %34 = vector.extract_strided_slice %0 {offsets = [5, 0], sizes = [1, 512], strides = [1, 1]} : vector<8x512xf32> to vector<1x512xf32>
    %35 = vector.broadcast %33 : vector<8x1xf32> to vector<8x512xf32>
    %36 = vector.broadcast %34 : vector<1x512xf32> to vector<8x512xf32>
    %37 = arith.mulf %35, %36 : vector<8x512xf32>
    %38 = arith.addf %32, %37 : vector<8x512xf32>
    %39 = vector.extract_strided_slice %1 {offsets = [0, 6], sizes = [8, 1], strides = [1, 1]} : vector<8x8xf32> to vector<8x1xf32>
    %40 = vector.extract_strided_slice %0 {offsets = [6, 0], sizes = [1, 512], strides = [1, 1]} : vector<8x512xf32> to vector<1x512xf32>
    %41 = vector.broadcast %39 : vector<8x1xf32> to vector<8x512xf32>
    %42 = vector.broadcast %40 : vector<1x512xf32> to vector<8x512xf32>
    %43 = arith.mulf %41, %42 : vector<8x512xf32>
    %44 = arith.addf %38, %43 : vector<8x512xf32>
    %45 = vector.extract_strided_slice %1 {offsets = [0, 7], sizes = [8, 1], strides = [1, 1]} : vector<8x8xf32> to vector<8x1xf32>
    %46 = vector.extract_strided_slice %0 {offsets = [7, 0], sizes = [1, 512], strides = [1, 1]} : vector<8x512xf32> to vector<1x512xf32>
    %47 = vector.broadcast %45 : vector<8x1xf32> to vector<8x512xf32>
    %48 = vector.broadcast %46 : vector<1x512xf32> to vector<8x512xf32>
    %49 = arith.mulf %47, %48 : vector<8x512xf32>
    %50 = arith.addf %44, %49 : vector<8x512xf32>
    %c0_5 = arith.constant 0 : index
    %c0_6 = arith.constant 0 : index
    %51 = vector.load %arg4[%c0_5, %c0_6] : memref<8x512xf32, #tpu.memory_space<vmem>>, vector<8x512xf32>
    tpu.vector_store %arg4[%c0_5, %c0_6], %50 {strides = array<i32>} : memref<8x512xf32, #tpu.memory_space<vmem>>, vector<8x512xf32>,
    return
  }
  func.func @transform_0(%arg0: i32) -> (i32, i32) {
    %c0_i32 = arith.constant 0 : i32
    %c0_i32_0 = arith.constant 0 : i32
    return %c0_i32, %arg0 : i32, i32
  }
  func.func @transform_1(%arg0: i32) -> (i32, i32) {
    %c0_i32 = arith.constant 0 : i32
    %c0_i32_0 = arith.constant 0 : i32
    %c0_i32_1 = arith.constant 0 : i32
    return %c0_i32, %c0_i32_0 : i32, i32
  }
  func.func @transform_2(%arg0: i32) -> (i32, i32) {
    %c0_i32 = arith.constant 0 : i32
    %c0_i32_0 = arith.constant 0 : i32
    return %c0_i32, %arg0 : i32, i32
  }
  func.func @transform_3(%arg0: i32) -> (i32, i32) {
    %c0_i32 = arith.constant 0 : i32
    %c0_i32_0 = arith.constant 0 : i32
    return %c0_i32, %arg0 : i32, i32
  }
}

</mosaic_0001>

<bundles_post_ra>
// kernel: tpu_custom_call.1
= control target key start
LH: loop header
LB: loop body
LE: loop exit
PB: predicated region body
PF: predicated region fallthrough
CT: control target
= control target key end

     0   :  { %8 = vsyncpa [#allocation3], 0  ;;  %s432_s0 = inlined_call_operand.hbm [shape: f32[8,512], index: 0, kind: input, shape index: {}]   ;;  %s433_s1 = inlined_call_operand.hbm [shape: f32[8,8], index: 1, kind: input, shape index: {}]   ;;  %s434_s2 = inlined_call_operand.hbm [shape: f32[8,512], index: 2, kind: input, shape index: {}]   ;;  %s435_s3 = inlined_call_operand.hbm [shape: f32[8,512], index: 3, kind: output, shape index: {}]  }
   0x1   :  { %9 = vsyncpa [#allocation6], 0  ;;  %s27_s14 = sshll.u32 %s433_s1, 4  ;;  %s28_s14 = int_to_ptr.hbm [resolvable:$true] %s27_s14 }
   0x2   :  { %10 = vsyncpa [#allocation4], 0  ;;  %s339_s15 = smov [#allocation5]   ;;  %s16_s19 = sshll.u32 %s432_s0, 4  ;;  %s17_s19 = int_to_ptr.hbm [resolvable:$true] %s16_s19 }
   0x3   :  { %s29_s16 = sshll.u32 %s339_s15, 4  ;;  %s340_s20 = smov [#allocation2]   ;;  %s30_s16 = int_to_ptr.vmem [resolvable:$true] %s29_s16 }
   0x4   :  { %32 = dma.hbm_to_vmem [thread:$0]  %s28_s14, 128, %s30_s16, [#allocation6]  }
   0x5   :  { %s18_s21 = sshll.u32 %s340_s20, 4  ;;  %s38_s24 = sshll.u32 %s434_s2, 4  ;;  %s19_s21 = int_to_ptr.vmem [resolvable:$true] %s18_s21  ;;  %s39_s24 = int_to_ptr.hbm [resolvable:$true] %s38_s24 }
   0x6   :  { %21 = dma.hbm_to_vmem [thread:$0]  %s17_s19, 512, %s19_s21, [#allocation3]  }
   0x7   :  { %s341_s1 = smov [#allocation7]  }
   0x8   :  { %s40_s25 = sshll.u32 %s341_s1, 4  ;;  %s41_s25 = int_to_ptr.vmem [resolvable:$true] %s40_s25 }
   0x9   :  { %43 = dma.hbm_to_vmem [thread:$0]  %s39_s24, 512, %s41_s25, [#allocation6]  }
   0xa   :  { %333 = dma.done.wait [#allocation3], 512  }
   0xb   :  { %334 = vsyncadd [#allocation3], 4294966784 }
   0xc   :  { %335 = dma.done.wait [#allocation6], 640  }
   0xd   :  { %336 = vsyncadd [#allocation6], 4294966656  ;;  %v342_v0 = vmov 0   ;;  %v343_v1 = vmov 2   ;;  %v344_v2 = vmov 4   ;;  %v60_v3 = vld [vmem:[#allocation5] sm:$0xff] }
   0xe   :  { %228 = vset.pattern.permute.xlu0 %v342_v0  ;;  %230 = vset.pattern.permute.xlu1 %v343_v1  ;;  %v345_v4 = vmov 1   ;;  %v346_v5 = vmov 3   ;;  %v347_v6 = vmov 5   ;;  %v348_v7 = vmov 6   ;;  %v380_v10 = vld [vmem:[#allocation2] sm:$0xff]  ;;  %v382_v11 = vld [vmem:[#allocation2 + $0x8] sm:$0xff] }
   0xf   :  { %232 = vset.pattern.permute.xlu2 %v344_v2  ;;  %67 = vperm.xlu0 %228, %v60_v3   ;;  %v349_v8 = vmov 7   ;;  %v384_v12 = vld [vmem:[#allocation2 + $0x10] sm:$0xff]  ;;  %v386_v13 = vld [vmem:[#allocation2 + $0x18] sm:$0xff]  ;;  %v70_v14 = vperm.slane %v380_v10, 0  ;;  %v71_v15 = vperm.slane %v382_v11, 0  ;;  %v134_v20 = vperm.slane %v380_v10, 4 }
  0x10   :  { %99 = vperm.xlu1 %230, %v60_v3   ;;  %131 = vperm.xlu2 %232, %v60_v3   ;;  %v72_v16 = vperm.slane %v384_v12, 0  ;;  %v73_v18 = vperm.slane %v386_v13, 0  ;;  %v135_v21 = vperm.slane %v382_v11, 4  ;;  %v136_v22 = vperm.slane %v384_v12, 4  ;;  %v61_v44 = vld [vmem:[#allocation7] sm:$0xff]  ;;  %v62_v46 = vld [vmem:[#allocation7 + $0x8] sm:$0xff] }
  0x11   :  { %v102_v23 = vperm.slane %v380_v10, 2  ;;  %v103_v24 = vperm.slane %v382_v11, 2  ;;  %v104_v25 = vperm.slane %v384_v12, 2  ;;  %v105_v26 = vperm.slane %v386_v13, 2  ;;  %v63_v47 = vld [vmem:[#allocation7 + $0x10] sm:$0xff]  ;;  %v64_v48 = vld [vmem:[#allocation7 + $0x18] sm:$0xff] }
  0x12   :  { %v137_v27 = vperm.slane %v386_v13, 4  ;;  %v86_v28 = vperm.slane %v380_v10, 1  ;;  %v87_v29 = vperm.slane %v382_v11, 1  ;;  %v88_v30 = vperm.slane %v384_v12, 1  ;;  %s350_s0 = smov [#allocation8]   ;;  %s205_s28 = sshll.u32 %s435_s3, 4  ;;  %s206_s28 = int_to_ptr.hbm [resolvable:$true] %s205_s28 }
  0x13   :  { %v89_v31 = vperm.slane %v386_v13, 1  ;;  %v118_v32 = vperm.slane %v380_v10, 3  ;;  %v119_v33 = vperm.slane %v382_v11, 3  ;;  %v120_v34 = vperm.slane %v384_v12, 3  ;;  %s203_s2 = sshll.u32 %s350_s0, 4  ;;  %s204_s2 = int_to_ptr.vmem [resolvable:$true] %s203_s2 }
  0x14   :  { %v121_v38 = vperm.slane %v386_v13, 3  ;;  %v150_v49 = vperm.slane %v380_v10, 5  ;;  %v151_v50 = vperm.slane %v382_v11, 5  ;;  %v152_v51 = vperm.slane %v384_v12, 5 }
  0x15   :  { %v153_v52 = vperm.slane %v386_v13, 5  ;;  %v166_v53 = vperm.slane %v380_v10, 6  ;;  %v167_v54 = vperm.slane %v382_v11, 6  ;;  %v168_v55 = vperm.slane %v384_v12, 6 }
  0x16   :  { %v169_v56 = vperm.slane %v386_v13, 6  ;;  %v182_v57 = vperm.slane %v380_v10, 7  ;;  %v183_v58 = vperm.slane %v382_v11, 7  ;;  %v184_v59 = vperm.slane %v384_v12, 7 }
  0x17   :  { %229 = vset.pattern.permute.xlu0 %v345_v4 }
  0x18   :  { %231 = vset.pattern.permute.xlu1 %v346_v5  ;;  %83 = vperm.xlu0 %229, %v60_v3  }
  0x19   :  { %115 = vperm.xlu1 %231, %v60_v3   ;;  %233 = vset.pattern.permute.xlu2 %v347_v6 }
  0x1a   :  { %147 = vperm.xlu2 %233, %v60_v3  }
  0x20   :  { %236 = vset.pattern.permute.xlu0 %v349_v8 }
  0x21   :  { %234 = vset.pattern.permute.xlu1 %v348_v7 }
  0x22   :  { %163 = vperm.xlu1 %234, %v60_v3   ;;  %235 = vset.pattern.permute.xlu2 %v349_v8 }
  0x23   :  { %179 = vperm.xlu2 %235, %v60_v3  }
  0x6a   :  { %v132_v9 = vpop.permute.xlu2 %131 }
  0x6b   :  { %v407_v35 = vmul.f32 %v134_v20, %v132_v9  ;;  %v409_v36 = vmul.f32 %v135_v21, %v132_v9  ;;  %v411_v37 = vmul.f32 %v136_v22, %v132_v9  ;;  %v141_v45 = vmul.f32 %v137_v27, %v132_v9 }
  0x74   :  { %v148_v39 = vpop.permute.xlu2 %147 }
  0x81   :  { %v68_v17 = vpop.permute.xlu0 %67 }
  0x82   :  { %v100_v19 = vpop.permute.xlu1 %99  ;;  %v74_v40 = vmul.f32 %v70_v14, %v68_v17  ;;  %v75_v41 = vmul.f32 %v71_v15, %v68_v17  ;;  %v76_v42 = vmul.f32 %v72_v16, %v68_v17  ;;  %v77_v43 = vmul.f32 %v73_v18, %v68_v17 }
  0x83   :  { %v106_v6 = vmul.f32 %v102_v23, %v100_v19  ;;  %v107_v7 = vmul.f32 %v103_v24, %v100_v19  ;;  %v108_v8 = vmul.f32 %v104_v25, %v100_v19  ;;  %v109_v9 = vmul.f32 %v105_v26, %v100_v19 }
  0x84   :  { %v78_v61 = vadd.f32 %v74_v40, %v61_v44  ;;  %v79_v62 = vadd.f32 %v75_v41, %v62_v46  ;;  %v80_v63 = vadd.f32 %v76_v42, %v63_v47  ;;  %v81_v0 = vadd.f32 %v77_v43, %v64_v48 }
  0x85   :  { %v157_v23 = vmul.f32 %v153_v52, %v148_v39  ;;  %v185_v40 = vperm.slane %v386_v13, 7 }
  0x8a   :  { %v84_v60 = vpop.permute.xlu0 %83 }
  0x8b   :  { %v116_v1 = vpop.permute.xlu1 %115  ;;  %v90_v2 = vmul.f32 %v86_v28, %v84_v60  ;;  %v91_v3 = vmul.f32 %v87_v29, %v84_v60  ;;  %v92_v4 = vmul.f32 %v88_v30, %v84_v60  ;;  %v93_v5 = vmul.f32 %v89_v31, %v84_v60  ;;  %v180_v28 = vpop.permute.xlu2 %179 }
  0x8c   :  { %v122_v16 = vmul.f32 %v118_v32, %v116_v1  ;;  %v123_v12 = vmul.f32 %v119_v33, %v116_v1  ;;  %v124_v17 = vmul.f32 %v120_v34, %v116_v1  ;;  %v125_v18 = vmul.f32 %v121_v38, %v116_v1 }
  0x8d   :  { %v94_v14 = vadd.f32 %v90_v2, %v78_v61  ;;  %v95_v10 = vadd.f32 %v91_v3, %v79_v62  ;;  %v96_v15 = vadd.f32 %v92_v4, %v80_v63  ;;  %v97_v11 = vadd.f32 %v93_v5, %v81_v0 }
  0x8e   :  { %v154_v29 = vmul.f32 %v150_v49, %v148_v39  ;;  %v155_v30 = vmul.f32 %v151_v50, %v148_v39  ;;  %v156_v31 = vmul.f32 %v152_v51, %v148_v39  ;;  %v186_v41 = vmul.f32 %v182_v57, %v180_v28 }
  0x8f   :  { %v110_v20 = vadd.f32 %v106_v6, %v94_v14  ;;  %v111_v21 = vadd.f32 %v107_v7, %v95_v10  ;;  %v112_v22 = vadd.f32 %v108_v8, %v96_v15  ;;  %v113_v27 = vadd.f32 %v109_v9, %v97_v11 }
  0x90   :  { %v187_v32 = vmul.f32 %v183_v58, %v180_v28  ;;  %v188_v33 = vmul.f32 %v184_v59, %v180_v28  ;;  %v189_v13 = vmul.f32 %v185_v40, %v180_v28 }
  0x91   :  { %v126_v24 = vadd.f32 %v122_v16, %v110_v20  ;;  %v127_v25 = vadd.f32 %v123_v12, %v111_v21  ;;  %v128_v19 = vadd.f32 %v124_v17, %v112_v22  ;;  %v129_v26 = vadd.f32 %v125_v18, %v113_v27 }
  0x93   :  { %v142_v38 = vadd.f32 %v407_v35, %v126_v24  ;;  %v143_v42 = vadd.f32 %v409_v36, %v127_v25  ;;  %v144_v43 = vadd.f32 %v411_v37, %v128_v19  ;;  %v145_v44 = vadd.f32 %v141_v45, %v129_v26 }
  0x94   :  { %v164_v34 = vpop.permute.xlu1 %163 }
  0x95   :  { %v170_v46 = vmul.f32 %v166_v53, %v164_v34  ;;  %v171_v47 = vmul.f32 %v167_v54, %v164_v34  ;;  %v172_v39 = vmul.f32 %v168_v55, %v164_v34  ;;  %v173_v48 = vmul.f32 %v169_v56, %v164_v34 }
  0x96   :  { %v158_v49 = vadd.f32 %v154_v29, %v142_v38  ;;  %v159_v50 = vadd.f32 %v155_v30, %v143_v42  ;;  %v160_v51 = vadd.f32 %v156_v31, %v144_v43  ;;  %v161_v52 = vadd.f32 %v157_v23, %v145_v44 }
  0x98   :  { %v174_v57 = vadd.f32 %v170_v46, %v158_v49  ;;  %v175_v58 = vadd.f32 %v171_v47, %v159_v50  ;;  %v176_v59 = vadd.f32 %v172_v39, %v160_v51  ;;  %v177_v60 = vadd.f32 %v173_v48, %v161_v52 }
  0x9a   :  { %v190_v61 = vadd.f32 %v186_v41, %v174_v57  ;;  %v191_v35 = vadd.f32 %v187_v32, %v175_v58  ;;  %v192_v62 = vadd.f32 %v188_v33, %v176_v59  ;;  %v193_v36 = vadd.f32 %v189_v13, %v177_v60 }
  0x9c   :  { %194 = vst [vmem:[#allocation8] sm:$0xff] %v190_v61 }
  0x9d   :  { %195 = vst [vmem:[#allocation8 + $0x8] sm:$0xff] %v191_v35 }
  0x9e   :  { %196 = vst [vmem:[#allocation8 + $0x10] sm:$0xff] %v192_v62 }
  0x9f   :  { %197 = vst [vmem:[#allocation8 + $0x18] sm:$0xff] %v193_v36 }
  0xa0   :  { %208 = dma.vmem_to_hbm [thread:$0]  %s204_s2, 512, %s206_s28, [#allocation4]  }
  0xa1   :  { %337 = dma.done.wait [#allocation4], 512  }
  0xa2   :  { %338 = vsyncadd [#allocation4], 4294966784 }
  0xa3   :  { %213 = vsyncpa [#allocation3], 1 }
  0xa4   :  { %214 = vsyncpa [#allocation6], 1 }
  0xa5   :  { %215 = vsyncpa [#allocation4], 1 }

</bundles_post_ra>
